<compile_context>
chip_gen: v5e
topology: v5e:2x2
jax: 0.10.0
libtpu: 0.0.40
codegen_flags: <defaults>
</compile_context>

<pallas_src>
import functools

import jax
import jax.numpy as jnp
from jax.experimental import pallas as pl
from jax.experimental.pallas import tpu as pltpu

NEG_SLOPE = 0.01  # PyTorch LeakyReLU default negative_slope
LANE = 128
SUBLANE = 8


def _round_up(x, m):
    return ((x + m - 1) // m) * m


def _leaky_relu(x):
    return jnp.where(x > 0, x, NEG_SLOPE * x)


def _rps_mlp_kernel(x_ref, w1_ref, b1_ref, wm_ref, bm_ref, wo_ref, bo_ref,
                    o_ref, h_ref, *, has_mid):
    """Grid = (batch_tile, layer_step). h_ref persists across layer steps."""
    l = pl.program_id(1)
    n_l = pl.num_programs(1)

    # layer_1 + LeakyReLU on the first layer step of this batch tile.
    @pl.when(l == 0)
    def _first_layer():
        w1 = w1_ref[...]
        acc = jnp.dot(x_ref[...].astype(w1.dtype), w1,
                      preferred_element_type=jnp.float32)
        h_ref[...] = _leaky_relu(acc + b1_ref[...])

    # One mid layer per layer step (weights streamed per step via BlockSpec).
    if has_mid:
        wm = wm_ref[0]                       # (H, H) bf16
        acc = jnp.dot(h_ref[...].astype(wm.dtype), wm,
                      preferred_element_type=jnp.float32)
        h_ref[...] = _leaky_relu(acc + bm_ref[0])

    # layer_out (no activation) on the last layer step.
    @pl.when(l == n_l - 1)
    def _last_layer():
        wo = wo_ref[...]
        acc = jnp.dot(h_ref[...].astype(wo.dtype), wo,
                      preferred_element_type=jnp.float32)
        o_ref[...] = (acc + bo_ref[...]).astype(o_ref.dtype)


def init_params(key, game_memory, hidden_size, mid_layers):
    """PyTorch-Linear-style init; weights stored pre-transposed (in, out)."""
    in_features = 3 * game_memory
    ks = jax.random.split(key, 6)

    def uniform(k, shape, fan_in):
        bound = 1.0 / jnp.sqrt(float(fan_in))
        return jax.random.uniform(k, shape, jnp.float32, -bound, bound)

    w1 = uniform(ks[0], (in_features, hidden_size), in_features)
    b1 = uniform(ks[1], (1, hidden_size), in_features)
    wm = uniform(ks[2], (max(mid_layers, 1), hidden_size, hidden_size), hidden_size)
    bm = uniform(ks[3], (max(mid_layers, 1), 1, hidden_size), hidden_size)
    if mid_layers == 0:
        wm = wm[:0]
        bm = bm[:0]
    wo = uniform(ks[4], (hidden_size, 3), hidden_size)
    bo = uniform(ks[5], (1, 3), hidden_size)
    return {"w1": w1, "b1": b1, "wm": wm, "bm": bm, "wo": wo, "bo": bo}


def prepare_params(params, *, weight_dtype=jnp.bfloat16):
    """One-time: zero-pad feature dims to 128-lane multiples, cast weights."""
    w1, b1 = params["w1"], params["b1"]
    wm, bm = params["wm"], params["bm"]
    wo, bo = params["wo"], params["bo"]

    in_f, hidden = w1.shape
    out_dim = wo.shape[1]
    mid = wm.shape[0]

    in_p = _round_up(in_f, LANE)
    h_p = _round_up(hidden, LANE)
    out_p = _round_up(out_dim, LANE)

    def pad2(a, r, c, dtype):
        out = jnp.zeros((r, c), dtype)
        return out.at[: a.shape[0], : a.shape[1]].set(a.astype(dtype))

    w1p = pad2(w1, in_p, h_p, weight_dtype)
    b1p = pad2(b1, 1, h_p, jnp.float32)
    wop = pad2(wo, h_p, out_p, weight_dtype)
    bop = pad2(bo, 1, out_p, jnp.float32)

    if mid > 0:
        wmp = jnp.zeros((mid, h_p, h_p), weight_dtype)
        wmp = wmp.at[:, :hidden, :hidden].set(wm.astype(weight_dtype))
        bmp = jnp.zeros((mid, 1, h_p), jnp.float32)
        bmp = bmp.at[:, :, :hidden].set(bm.astype(jnp.float32))
    else:
        # Dummy single (unused) mid-layer block so BlockSpecs stay well-formed.
        wmp = jnp.zeros((1, h_p, h_p), weight_dtype)
        bmp = jnp.zeros((1, 1, h_p), jnp.float32)

    meta = {"in_features": in_f, "hidden": hidden, "out_dim": out_dim,
            "mid_layers": mid}
    return {"w1": w1p, "b1": b1p, "wm": wmp, "bm": bmp, "wo": wop, "bo": bop,
            "meta": meta}


def rps_model_forward(x, padded):
    """Forward pass of RPSModel for x of shape (batch, 3*game_memory)."""
    meta = padded["meta"]
    in_f, out_dim, mid = meta["in_features"], meta["out_dim"], meta["mid_layers"]
    w1, b1 = padded["w1"], padded["b1"]
    wm, bm = padded["wm"], padded["bm"]
    wo, bo = padded["wo"], padded["bo"]

    batch = x.shape[0]
    in_p, h_p = w1.shape
    out_p = wo.shape[1]

    # Batch tile: sublane-aligned, up to 128 rows per grid step.
    tb = min(128, _round_up(batch, SUBLANE))
    batch_p = _round_up(batch, tb)
    nb = batch_p // tb
    n_l = max(mid, 1)

    xp = jnp.zeros((batch_p, in_p), x.dtype).at[:batch, :in_f].set(x)

    kernel = functools.partial(_rps_mlp_kernel, has_mid=(mid > 0))

    out_padded = pl.pallas_call(
        kernel,
        out_shape=jax.ShapeDtypeStruct((batch_p, out_p), x.dtype),
        grid=(nb, n_l),
        in_specs=[
            pl.BlockSpec((tb, in_p), lambda b, l: (b, 0)),       # x (per batch tile)
            pl.BlockSpec((in_p, h_p), lambda b, l: (0, 0)),      # w1
            pl.BlockSpec((1, h_p), lambda b, l: (0, 0)),         # b1
            pl.BlockSpec((1, h_p, h_p), lambda b, l: (l, 0, 0)),  # wm[l] streamed
            pl.BlockSpec((1, 1, h_p), lambda b, l: (l, 0, 0)),   # bm[l]
            pl.BlockSpec((h_p, out_p), lambda b, l: (0, 0)),     # wo
            pl.BlockSpec((1, out_p), lambda b, l: (0, 0)),       # bo
        ],
        out_specs=pl.BlockSpec((tb, out_p), lambda b, l: (b, 0)),
        scratch_shapes=[pltpu.VMEM((tb, h_p), jnp.float32)],      # resident activation
        compiler_params=pltpu.CompilerParams(
            dimension_semantics=("parallel", "arbitrary")),
    )(xp, w1, b1, wm, bm, wo, bo)

    return out_padded[:batch, :out_dim]


def reference_forward(x, params, *, weight_dtype=jnp.bfloat16):
    """Pure-JAX reference mirroring the kernel math (bf16 dots, f32 accum)."""
    def lin(a, w, b):
        w = w.astype(weight_dtype)
        y = jnp.dot(a.astype(weight_dtype), w, preferred_element_type=jnp.float32)
        return y + b.astype(jnp.float32)

    h = _leaky_relu(lin(x, params["w1"], params["b1"]))
    for i in range(params["wm"].shape[0]):
        h = _leaky_relu(lin(h, params["wm"][i], params["bm"][i]))
    return lin(h, params["wo"], params["bo"])


if __name__ == "__main__":
    # Small shapes consistent with the module: game_memory=8 -> in_features=24,
    # hidden_size=32, mid_layers=2, batch=2. (For real throughput, batch many
    # games/timesteps so batch >= 128 — the wrapper/kernel already support it.)
    game_memory = 8
    hidden_size = 32
    mid_layers = 2
    batch = 2

    key = jax.random.PRNGKey(0)
    k_params, k_x = jax.random.split(key)
    params = init_params(k_params, game_memory, hidden_size, mid_layers)
    x = jax.random.normal(k_x, (batch, 3 * game_memory), jnp.float32)

    padded = prepare_params(params)
    out = rps_model_forward(x, padded)
    out = jax.block_until_ready(out)

    ref = reference_forward(x, params)
    assert out.shape == (batch, 3), out.shape
    assert jnp.allclose(out, ref, atol=1e-2, rtol=1e-2), (out, ref)

    print("KERNEL_OK")
</pallas_src>

<mosaic_0001>
module attributes {stable_mosaic.version = 11 : i64} {
  func.func @_rps_mlp_kernel(%arg0: i32, %arg1: i32, %arg2: memref<8x128xf32, #tpu.memory_space<vmem>>, %arg3: memref<128x128xbf16, #tpu.memory_space<vmem>>, %arg4: memref<1x128xf32, #tpu.memory_space<vmem>>, %arg5: memref<1x128x128xbf16, #tpu.memory_space<vmem>>, %arg6: memref<1x1x128xf32, #tpu.memory_space<vmem>>, %arg7: memref<128x128xbf16, #tpu.memory_space<vmem>>, %arg8: memref<1x128xf32, #tpu.memory_space<vmem>>, %arg9: memref<8x128xf32, #tpu.memory_space<vmem>>, %arg10: memref<8x128xf32, #tpu.memory_space<vmem>>) attributes {dimension_semantics = [#tpu.dimension_semantics<parallel>, #tpu.dimension_semantics<arbitrary>], iteration_bounds = array<i64: 1, 2>, scalar_prefetch = 0 : i64, scratch_operands = 1 : i64, tpu.core_type = #tpu.core_type<tc>, window_params = [{transform_indices = @transform_0, window_bounds = array<i64: 8, 128>}, {pipeline_mode = #tpu.pipeline_mode<synchronous>, transform_indices = @transform_1, window_bounds = array<i64: 128, 128>}, {pipeline_mode = #tpu.pipeline_mode<synchronous>, transform_indices = @transform_2, window_bounds = array<i64: 1, 128>}, {transform_indices = @transform_3, window_bounds = array<i64: 1, 128, 128>}, {transform_indices = @transform_4, window_bounds = array<i64: 1, 1, 128>}, {pipeline_mode = #tpu.pipeline_mode<synchronous>, transform_indices = @transform_5, window_bounds = array<i64: 128, 128>}, {pipeline_mode = #tpu.pipeline_mode<synchronous>, transform_indices = @transform_6, window_bounds = array<i64: 1, 128>}, {transform_indices = @transform_7, window_bounds = array<i64: 8, 128>}]} {
    %c0_i32 = arith.constant 0 : i32
    %0 = arith.cmpi eq, %arg1, %c0_i32 : i32
    %1 = arith.extui %0 : i1 to i32
    %c0_i32_0 = arith.constant 0 : i32
    %2 = arith.cmpi ne, %1, %c0_i32_0 : i32
    scf.if %2 {
      %c0_13 = arith.constant 0 : index
      %c0_14 = arith.constant 0 : index
      %21 = vector.load %arg3[%c0_13, %c0_14] : memref<128x128xbf16, #tpu.memory_space<vmem>>, vector<128x128xbf16>
      %c0_15 = arith.constant 0 : index
      %c0_16 = arith.constant 0 : index
      %22 = vector.load %arg2[%c0_15, %c0_16] : memref<8x128xf32, #tpu.memory_space<vmem>>, vector<8x128xf32>
      %23 = arith.truncf %22 : vector<8x128xf32> to vector<8x128xbf16>
      %cst_17 = arith.constant dense<0.000000e+00> : vector<8x128xf32>
      %24 = tpu.matmul %23, %21, %cst_17 {dimension_numbers = #tpu.dot_dimension_numbers<[1], [0], [0], [1], [0, 0, 1, 1], [], []>} : vector<8x128xbf16>, vector<128x128xbf16>, vector<8x128xf32> -> vector<8x128xf32>
      %c0_18 = arith.constant 0 : index
      %c0_19 = arith.constant 0 : index
      %25 = vector.load %arg4[%c0_18, %c0_19] : memref<1x128xf32, #tpu.memory_space<vmem>>, vector<1x128xf32>
      %26 = vector.broadcast %25 : vector<1x128xf32> to vector<8x128xf32>
      %27 = arith.addf %24, %26 : vector<8x128xf32>
      %cst_20 = arith.constant 0.000000e+00 : f32
      %28 = vector.broadcast %cst_20 : f32 to vector<8x128xf32>
      %29 = arith.cmpf ogt, %27, %28 : vector<8x128xf32>
      %cst_21 = arith.constant 0.00999999977 : f32
      %30 = vector.broadcast %cst_21 : f32 to vector<8x128xf32>
      %31 = arith.mulf %30, %27 : vector<8x128xf32>
      %32 = arith.select %29, %27, %31 : vector<8x128xi1>, vector<8x128xf32>
      %c0_22 = arith.constant 0 : index
      %c0_23 = arith.constant 0 : index
      %33 = vector.load %arg10[%c0_22, %c0_23] : memref<8x128xf32, #tpu.memory_space<vmem>>, vector<8x128xf32>
      tpu.vector_store %arg10[%c0_22, %c0_23], %32 {strides = array<i32>} : memref<8x128xf32, #tpu.memory_space<vmem>>, vector<8x128xf32>,
    } else {
    }
    %c0 = arith.constant 0 : index
    %c0_1 = arith.constant 0 : index
    %c0_2 = arith.constant 0 : index
    %3 = vector.load %arg5[%c0, %c0_1, %c0_2] : memref<1x128x128xbf16, #tpu.memory_space<vmem>>, vector<1x128x128xbf16>
    %4 = vector.shape_cast %3 : vector<1x128x128xbf16> to vector<128x128xbf16>
    %c0_3 = arith.constant 0 : index
    %c0_4 = arith.constant 0 : index
    %5 = vector.load %arg10[%c0_3, %c0_4] : memref<8x128xf32, #tpu.memory_space<vmem>>, vector<8x128xf32>
    %6 = arith.truncf %5 : vector<8x128xf32> to vector<8x128xbf16>
    %cst = arith.constant dense<0.000000e+00> : vector<8x128xf32>
    %7 = tpu.matmul %6, %4, %cst {dimension_numbers = #tpu.dot_dimension_numbers<[1], [0], [0], [1], [0, 0, 1, 1], [], []>} : vector<8x128xbf16>, vector<128x128xbf16>, vector<8x128xf32> -> vector<8x128xf32>
    %c0_5 = arith.constant 0 : index
    %c0_6 = arith.constant 0 : index
    %c0_7 = arith.constant 0 : index
    %8 = vector.load %arg6[%c0_5, %c0_6, %c0_7] : memref<1x1x128xf32, #tpu.memory_space<vmem>>, vector<1x1x128xf32>
    %9 = vector.shape_cast %8 : vector<1x1x128xf32> to vector<1x128xf32>
    %10 = vector.broadcast %9 : vector<1x128xf32> to vector<8x128xf32>
    %11 = arith.addf %7, %10 : vector<8x128xf32>
    %cst_8 = arith.constant 0.000000e+00 : f32
    %12 = vector.broadcast %cst_8 : f32 to vector<8x128xf32>
    %13 = arith.cmpf ogt, %11, %12 : vector<8x128xf32>
    %cst_9 = arith.constant 0.00999999977 : f32
    %14 = vector.broadcast %cst_9 : f32 to vector<8x128xf32>
    %15 = arith.mulf %14, %11 : vector<8x128xf32>
    %16 = arith.select %13, %11, %15 : vector<8x128xi1>, vector<8x128xf32>
    %c0_10 = arith.constant 0 : index
    %c0_11 = arith.constant 0 : index
    %17 = vector.load %arg10[%c0_10, %c0_11] : memref<8x128xf32, #tpu.memory_space<vmem>>, vector<8x128xf32>
    tpu.vector_store %arg10[%c0_10, %c0_11], %16 {strides = array<i32>} : memref<8x128xf32, #tpu.memory_space<vmem>>, vector<8x128xf32>,
    %c1_i32 = arith.constant 1 : i32
    %18 = arith.cmpi eq, %arg1, %c1_i32 : i32
    %19 = arith.extui %18 : i1 to i32
    %c0_i32_12 = arith.constant 0 : i32
    %20 = arith.cmpi ne, %19, %c0_i32_12 : i32
    scf.if %20 {
      %c0_13 = arith.constant 0 : index
      %c0_14 = arith.constant 0 : index
      %21 = vector.load %arg7[%c0_13, %c0_14] : memref<128x128xbf16, #tpu.memory_space<vmem>>, vector<128x128xbf16>
      %c0_15 = arith.constant 0 : index
      %c0_16 = arith.constant 0 : index
      %22 = vector.load %arg10[%c0_15, %c0_16] : memref<8x128xf32, #tpu.memory_space<vmem>>, vector<8x128xf32>
      %23 = arith.truncf %22 : vector<8x128xf32> to vector<8x128xbf16>
      %cst_17 = arith.constant dense<0.000000e+00> : vector<8x128xf32>
      %24 = tpu.matmul %23, %21, %cst_17 {dimension_numbers = #tpu.dot_dimension_numbers<[1], [0], [0], [1], [0, 0, 1, 1], [], []>} : vector<8x128xbf16>, vector<128x128xbf16>, vector<8x128xf32> -> vector<8x128xf32>
      %c0_18 = arith.constant 0 : index
      %c0_19 = arith.constant 0 : index
      %25 = vector.load %arg8[%c0_18, %c0_19] : memref<1x128xf32, #tpu.memory_space<vmem>>, vector<1x128xf32>
      %26 = vector.broadcast %25 : vector<1x128xf32> to vector<8x128xf32>
      %27 = arith.addf %24, %26 : vector<8x128xf32>
      %c0_20 = arith.constant 0 : index
      %c0_21 = arith.constant 0 : index
      %28 = vector.load %arg9[%c0_20, %c0_21] : memref<8x128xf32, #tpu.memory_space<vmem>>, vector<8x128xf32>
      tpu.vector_store %arg9[%c0_20, %c0_21], %27 {strides = array<i32>} : memref<8x128xf32, #tpu.memory_space<vmem>>, vector<8x128xf32>,
    } else {
    }
    return
  }
  func.func @transform_0(%arg0: i32, %arg1: i32) -> (i32, i32) {
    %c0_i32 = arith.constant 0 : i32
    %c0_i32_0 = arith.constant 0 : i32
    return %arg0, %c0_i32 : i32, i32
  }
  func.func @transform_1(%arg0: i32, %arg1: i32) -> (i32, i32) {
    %c0_i32 = arith.constant 0 : i32
    %c0_i32_0 = arith.constant 0 : i32
    %c0_i32_1 = arith.constant 0 : i32
    return %c0_i32, %c0_i32_0 : i32, i32
  }
  func.func @transform_2(%arg0: i32, %arg1: i32) -> (i32, i32) {
    %c0_i32 = arith.constant 0 : i32
    %c0_i32_0 = arith.constant 0 : i32
    %c0_i32_1 = arith.constant 0 : i32
    return %c0_i32, %c0_i32_0 : i32, i32
  }
  func.func @transform_3(%arg0: i32, %arg1: i32) -> (i32, i32, i32) {
    %c0_i32 = arith.constant 0 : i32
    %c0_i32_0 = arith.constant 0 : i32
    %c0_i32_1 = arith.constant 0 : i32
    return %arg1, %c0_i32, %c0_i32_0 : i32, i32, i32
  }
  func.func @transform_4(%arg0: i32, %arg1: i32) -> (i32, i32, i32) {
    %c0_i32 = arith.constant 0 : i32
    %c0_i32_0 = arith.constant 0 : i32
    %c0_i32_1 = arith.constant 0 : i32
    return %arg1, %c0_i32, %c0_i32_0 : i32, i32, i32
  }
  func.func @transform_5(%arg0: i32, %arg1: i32) -> (i32, i32) {
    %c0_i32 = arith.constant 0 : i32
    %c0_i32_0 = arith.constant 0 : i32
    %c0_i32_1 = arith.constant 0 : i32
    return %c0_i32, %c0_i32_0 : i32, i32
  }
  func.func @transform_6(%arg0: i32, %arg1: i32) -> (i32, i32) {
    %c0_i32 = arith.constant 0 : i32
    %c0_i32_0 = arith.constant 0 : i32
    %c0_i32_1 = arith.constant 0 : i32
    return %c0_i32, %c0_i32_0 : i32, i32
  }
  func.func @transform_7(%arg0: i32, %arg1: i32) -> (i32, i32) {
    %c0_i32 = arith.constant 0 : i32
    %c0_i32_0 = arith.constant 0 : i32
    return %arg0, %c0_i32 : i32, i32
  }
}

</mosaic_0001>

<bundles_post_ra>
// kernel: tpu_custom_call.1
= control target key start
LH: loop header
LB: loop body
LE: loop exit
PB: predicated region body
PF: predicated region fallthrough
CT: control target
= control target key end

     0   :  { %s1422_s0 = inlined_call_operand.hbm [shape: f32[8,128], index: 0, kind: input, shape index: {}]   ;;  %s1423_s1 = inlined_call_operand.hbm [shape: bf16[128,128], index: 1, kind: input, shape index: {}]   ;;  %s1424_s2 = inlined_call_operand.vmem [shape: f32[1,128], index: 2, kind: input, shape index: {}]   ;;  %s1425_s3 = inlined_call_operand.hbm [shape: bf16[2,128,128], index: 3, kind: input, shape index: {}]   ;;  %s1426_s4 = inlined_call_operand.vmem [shape: f32[2,1,128], index: 4, kind: input, shape index: {}]   ;;  %s1427_s5 = inlined_call_operand.hbm [shape: bf16[128,128], index: 5, kind: input, shape index: {}]   ;;  %s1428_s6 = inlined_call_operand.vmem [shape: f32[1,128], index: 6, kind: input, shape index: {}]   ;;  %s1429_s7 = inlined_call_operand.hbm [shape: f32[8,128], index: 7, kind: output, shape index: {}]  }
   0x1   :  { %1430 = sst [smem:[#allocation16_spill]] %s1422_s0 }
   0x2   :  { %1431 = sst [smem:[#allocation17_spill]] %s1423_s1 }
   0x3   :  { %1432 = sst [smem:[#allocation18_spill]] %s1427_s5 }
   0x4   :  { %12 = vsyncpa [#allocation4], 0 }
   0x5   :  { %13 = vsyncpa [#allocation7], 0 }
   0x6   :  { %14 = vsyncpa [#allocation5], 0  ;;  %s1248_s24 = smov 0   ;;  %s1250_s25 = smov 0  }
   0x7   :  { %s1252_s26 = smov 0   ;;  %s1254_s27 = smov 0  }
   0x8   :  { %s1256_s28 = smov 0   ;;  %s1258_s29 = smov 0  }
   0x9 LB: > { %s1277_s30 = sadd.s32 4294967295, %s1200_s29   ;;  %p114_p0 = scmp.ne.s32.totalorder %s1188_s26, %s1184_s25  ;;  %s1200_s29 = sphi %s1258_s29, %s20_s29   ;;  %s1196_s28 = sphi %s1256_s28, %s1446_s28   ;;  %s1192_s27 = sphi %s1254_s27, %s1445_s27   ;;  %s1188_s26 = sphi %s1252_s26, %s1444_s26   ;;  %s1184_s25 = sphi %s1250_s25, %s1443_s25   ;;  %s1180_s24 = sphi %s1248_s24, %s1442_s24  }
   0xa   : > { %p115_p1 = scmp.eq.s32.totalorder %s1200_s29, 0  ;;  %p120_p2 = scmp.ne.s32.totalorder %s1184_s25, %s1180_s24 }
   0xb   : > { %p121_p3 = scmp.eq.s32.totalorder %s1277_s30, 0  ;;  %p748_p5 = scmp.ge.s32.totalorder %s1200_s29, 1 }
   0xc   : > { %p1285_p4 = por %p115_p1, %p114_p0  ;;  %p225_p7 = scmp.lt.s32.totalorder %s1200_s29, 3 }
   0xd   : > { %p1292_p6 = por %p121_p3, %p120_p2  ;;  %s1435_s0 = sld [smem:[#allocation16_spill]] }
   0xe   : > { %p1300_p8 = pnand %p748_p5, %p225_p7  ;;  %s1202_s15 = smov [#allocation3]  }
   0xf   : > { %s241_s16 = sshll.u32 %s1202_s15, 4  ;;  %p923_p10 = scmp.lt.s32.totalorder %s1200_s29, 2  ;;  %s242_s16 = int_to_ptr.vmem [resolvable:$true] %s241_s16 }
  0x10   : > { %p906_p9 = pneg %p1300_p8  ;;  %s1438_s1 = sld [smem:[#allocation17_spill]] }
  0x11   : > { %p1318_p12 = pnand %p923_p10, %p1285_p4  ;;  %s1203_s22 = smov [#allocation6]  }
  0x12   : > { %p1309_p11 = pnand %p906_p9, %p121_p3  ;;  %s252_s23 = sshll.u32 %s1203_s22, 4  ;;  %s253_s23 = int_to_ptr.vmem [resolvable:$true] %s252_s23 }
  0x13   : > { %s239_s13 = sshll.u32 %s1435_s0, 4  ;;  %s1440_s5 = sld [smem:[#allocation18_spill]]  ;;  %s240_s13 = int_to_ptr.hbm [resolvable:$true] %s239_s13 }
  0x14   : > { %909 = dma.hbm_to_vmem [thread:$0]  (!%p1309_p11), %s240_s13, 128, %s242_s16, [#allocation4]  }
  0x15   : > { %s1204_s15 = smov 64   ;;  %s1205_s9 = smov 4  }
  0x16   : > { %s250_s20 = sshll.u32 %s1438_s1, 4  ;;  %s1206_s18 = smov [#allocation9]   ;;  %s251_s20 = int_to_ptr.hbm [resolvable:$true] %s250_s20 }
  0x17   : > { %912 = dma.hbm_to_vmem [thread:$0]  (!%p1309_p11), %s251_s20, 1024, %s253_s23, [#allocation7], %s1204_s15, %s1204_s15, %s1205_s9  }
  0x18   : > { %s269_s19 = sshll.u32 %s1206_s18, 4  ;;  %s29_s13 = sadd.s32 1, %s1196_s28  ;;  %s270_s19 = int_to_ptr.vmem [resolvable:$true] %s269_s19 }
  0x19   : > { %s267_s12 = sshll.u32 %s1440_s5, 4  ;;  %s286_s16 = sand.u32 1, %s1200_s29   ;;  %s268_s12 = int_to_ptr.hbm [resolvable:$true] %s267_s12 }
  0x1a   : > { %915 = dma.hbm_to_vmem [thread:$0]  (!%p1309_p11), %s268_s12, 1024, %s270_s19, [#allocation7], %s1204_s15, %s1204_s15, %s1205_s9  }
  0x1b   : > { %p30_p13 = scmp.ge.s32.totalorder %s29_s13, 2  ;;  %s288_s22 = sand.u32 1, %s1188_s26  }
  0x1c   : > { %s863_s24 = sshll.u32 %s1196_s28, 6  ;;  %s753_s11 = sshll.u32 %s288_s22, 6 }
  0x1d   : > { %s1448_s13 = smov (%p30_p13, %s29_s13), 0  ;;  %s295_s23 = scalar_lea.hbm %s1425_s3, %s863_s24 }
  0x1e   : > { %s104_s18 = ssub.s32 %s1196_s28, %s1448_s13  ;;  %s296_s17 = sshll.u32 %s295_s23, 4  ;;  %s297_s17 = int_to_ptr.hbm [resolvable:$true] %s296_s17 }
  0x1f   : > { %p105_p0 = scmp.eq.s32.totalorder %s104_s18, 0  ;;  %s290_s0 = scalar_lea.vmem [#allocation8], %s753_s11 }
  0x20   : > { %s298_s12 = sshll.u32 %s290_s0, 4  ;;  %s1441_s19 = sadd.s32 1, %s1188_s26  ;;  %s299_s12 = int_to_ptr.vmem [resolvable:$true] %s298_s12 }
  0x21   : > { %s1345_s1 = scalar_select %p105_p0, %s1188_s26, %s1441_s19  }
  0x22   : > { %s287_s5 = scalar_lea.sflag [#allocation4], %s286_s16  ;;  %316 = sbr.rel (%p1300_p8) target bundleno = 560 (0x230), region = 48 }
  0x23   : > { %919 = dma.hbm_to_vmem [thread:$0]  (!%p1318_p12), %s297_s17, 1024, %s299_s12, %s287_s5, %s1204_s15, %s1204_s15, %s1205_s9  }
  0x27   : > { %1159 = dma.done.wait (%p121_p3), [#allocation4], 128  }
  0x28   : > { %1161 = vsyncadd (%p121_p3), [#allocation4], 4294967168 }
  0x29   : > { %1163 = dma.done.wait (%p121_p3), [#allocation7], 1024  }
  0x2a   : > { %1165 = vsyncadd (%p121_p3), [#allocation7], 4294966272  ;;  %s328_s0 = sand.u32 1, %s1277_s30   ;;  %s330_s5 = sand.u32 1, %s1184_s25  }
  0x2b   : > { %s759_s8 = sshll.u32 %s330_s5, 6  ;;  %s329_s14 = scalar_lea.sflag [#allocation4], %s328_s0 }
  0x2c   : > { %s1361_s21 = scalar_lea.vmem [#allocation8], %s759_s8 }
  0x2d   : > { %1167 = dma.done.wait (%p1292_p6), %s329_s14, 1024  }
  0x2e   : > { %1169 = vsyncadd (%p1292_p6), %s329_s14, 4294966272 }
  0x2f   : > { %1171 = dma.done.wait (%p121_p3), [#allocation7], 1024  }
  0x30   : > { %1173 = vsyncadd (%p121_p3), [#allocation7], 4294966272  ;;  %p367_p1 = scmp.lt.s32.totalorder %s1192_s27, 1  ;;  %p761_p2 = scmp.ne.s32.totalorder %s1192_s27, 0 }
  0x32   : > { %s1373_s15 = scalar_select %p367_p1, %s1192_s27, 1 }
  0x33   : > { %373 = sbr.rel (%p761_p2) target bundleno = 222 (0xde), region = 68 }
  0x34   : > { %s369_s22 = scalar_lea.vmem %s1426_s4, %s1373_s15 }
  0x38   : > { %v871_v0 = vld [vmem:[#allocation6 + $0x38] sm:$0xff]  ;;  %v870_v1 = vld [vmem:[#allocation6 + $0x30] sm:$0xff]  ;;  %v869_v2 = vld [vmem:[#allocation6 + $0x28] sm:$0xff] }
  0x39   : > { %444 = vmatpush.bf16.msra.mxu0 %v871_v0  ;;  %v868_v3 = vld [vmem:[#allocation6 + $0x20] sm:$0xff]  ;;  %v867_v4 = vld [vmem:[#allocation6 + $0x18] sm:$0xff]  ;;  %v866_v5 = vld [vmem:[#allocation6 + $0x10] sm:$0xff] }
  0x3a   : > { %v865_v6 = vld [vmem:[#allocation6 + $0x8] sm:$0xff]  ;;  %v864_v7 = vld [vmem:[#allocation6] sm:$0xff]  ;;  %v390_v8 = vld [vmem:[#allocation3] sm:$0xff] }
  0x3b   : > { %v391_v9 = vpack.c.bf16 %v390_v8, %v390_v8  ;;  %v983_v10 = vld [vmem:[%s1424_s2] ss:$0 sm:$0xff] }
  0x3d   : > { %445 = vmatpush.bf16.msra.mxu0 %v870_v1 }
  0x41   : > { %446 = vmatpush.bf16.msra.mxu0 %v869_v2 }
  0x45   : > { %447 = vmatpush.bf16.msra.mxu0 %v868_v3 }
  0x49   : > { %448 = vmatpush.bf16.msra.mxu0 %v867_v4 }
  0x4d   : > { %449 = vmatpush.bf16.msra.mxu0 %v866_v5 }
  0x51   : > { %450 = vmatpush.bf16.msra.mxu0 %v865_v6 }
  0x55   : > { %451 = vmatpush.bf16.msra.mxu0 %v864_v7 }
  0x58   : > { %452 = vmatmul.bf16.vlgmr.msra.gmra.mxu0 %v391_v9 }
  0xd5   : > { %v453_v11 = vpop.f32.mrf.mxu0 }
  0xd6   : > { %v454_v12 = vadd.f32 %v983_v10, %v453_v11 }
  0xd8   : > { %vm457_vm0 = vcmp.gt.f32.partialorder %v454_v12, 0.0  ;;  %v458_v13 = vmul.f32 0.01, %v454_v12 }
  0xda   : > { %v459_v14 = vsel %vm457_vm0, %v454_v12, %v458_v13 }
  0xdb   : > { %460 = vst [vmem:[#allocation2] sm:$0xff] %v459_v14 }
  0xdd   : > { %v455_v15 = vpop.f32.mrf.mxu0 }
  0xde PF: > { %v879_v16 = vld [vmem:[%s1361_s21 + $0x38] sm:$0xff]  ;;  %v878_v17 = vld [vmem:[%s1361_s21 + $0x30] sm:$0xff]  ;;  %v877_v18 = vld [vmem:[%s1361_s21 + $0x28] sm:$0xff]  ;;  %p826_p3 = scmp.ne.s32.totalorder %s1192_s27, 1 }
  0xdf   : > { %531 = vmatpush.bf16.msra.mxu0 %v879_v16  ;;  %v876_v19 = vld [vmem:[%s1361_s21 + $0x20] sm:$0xff]  ;;  %v875_v20 = vld [vmem:[%s1361_s21 + $0x18] sm:$0xff]  ;;  %v874_v21 = vld [vmem:[%s1361_s21 + $0x10] sm:$0xff] }
  0xe0   : > { %v873_v22 = vld [vmem:[%s1361_s21 + $0x8] sm:$0xff]  ;;  %v872_v23 = vld [vmem:[%s1361_s21] sm:$0xff]  ;;  %v984_v26 = vld [vmem:[%s369_s22] ss:$0 sm:$0xff] }
  0xe2   : > { %v477_v24 = vld [vmem:[#allocation2] sm:$0xff] }
  0xe3   : > { %532 = vmatpush.bf16.msra.mxu0 %v878_v17  ;;  %v478_v25 = vpack.c.bf16 %v477_v24, %v477_v24 }
  0xe7   : > { %533 = vmatpush.bf16.msra.mxu0 %v877_v18 }
  0xeb   : > { %534 = vmatpush.bf16.msra.mxu0 %v876_v19 }
  0xef   : > { %535 = vmatpush.bf16.msra.mxu0 %v875_v20 }
  0xf3   : > { %536 = vmatpush.bf16.msra.mxu0 %v874_v21 }
  0xf7   : > { %537 = vmatpush.bf16.msra.mxu0 %v873_v22 }
  0xfb   : > { %538 = vmatpush.bf16.msra.mxu0 %v872_v23 }
  0xfe   : > { %539 = vmatmul.bf16.vlgmr.msra.gmra.mxu0 %v478_v25 }
 0x17b   : > { %v540_v27 = vpop.f32.mrf.mxu0 }
 0x17c   : > { %v541_v28 = vadd.f32 %v984_v26, %v540_v27 }
 0x17e   : > { %vm544_vm1 = vcmp.gt.f32.partialorder %v541_v28, 0.0  ;;  %v545_v29 = vmul.f32 0.01, %v541_v28 }
 0x17f   : > { %551 = sbr.rel (%p826_p3) target bundleno = 554 (0x22a), region = 72 }
 0x180   : > { %v546_v30 = vsel %vm544_vm1, %v541_v28, %v545_v29 }
 0x181   : > { %547 = vst [vmem:[#allocation2] sm:$0xff] %v546_v30 }
 0x183   : > { %v542_v31 = vpop.f32.mrf.mxu0 }
 0x184   : > { %v887_v32 = vld [vmem:[#allocation9 + $0x38] sm:$0xff]  ;;  %v886_v33 = vld [vmem:[#allocation9 + $0x30] sm:$0xff]  ;;  %v885_v34 = vld [vmem:[#allocation9 + $0x28] sm:$0xff] }
 0x185   : > { %622 = vmatpush.bf16.msra.mxu0 %v887_v32  ;;  %v884_v35 = vld [vmem:[#allocation9 + $0x20] sm:$0xff]  ;;  %v883_v36 = vld [vmem:[#allocation9 + $0x18] sm:$0xff]  ;;  %v882_v37 = vld [vmem:[#allocation9 + $0x10] sm:$0xff] }
 0x186   : > { %v881_v38 = vld [vmem:[#allocation9 + $0x8] sm:$0xff]  ;;  %v880_v39 = vld [vmem:[#allocation9] sm:$0xff]  ;;  %v985_v42 = vld [vmem:[%s1428_s6] ss:$0 sm:$0xff] }
 0x188   : > { %v568_v40 = vld [vmem:[#allocation2] sm:$0xff] }
 0x189   : > { %623 = vmatpush.bf16.msra.mxu0 %v886_v33  ;;  %v569_v41 = vpack.c.bf16 %v568_v40, %v568_v40 }
 0x18d   : > { %624 = vmatpush.bf16.msra.mxu0 %v885_v34 }
 0x191   : > { %625 = vmatpush.bf16.msra.mxu0 %v884_v35 }
 0x195   : > { %626 = vmatpush.bf16.msra.mxu0 %v883_v36 }
 0x199   : > { %627 = vmatpush.bf16.msra.mxu0 %v882_v37 }
 0x19d   : > { %628 = vmatpush.bf16.msra.mxu0 %v881_v38 }
 0x1a1   : > { %629 = vmatpush.bf16.msra.mxu0 %v880_v39 }
 0x1a4   : > { %630 = vmatmul.bf16.vlgmr.msra.gmra.mxu0 %v569_v41 }
 0x221   : > { %v631_v43 = vpop.f32.mrf.mxu0 }
 0x222   : > { %v632_v44 = vadd.f32 %v985_v42, %v631_v43 }
 0x224   : > { %635 = vst [vmem:[#allocation10] sm:$0xff] %v632_v44 }
 0x229   : > { %v633_v45 = vpop.f32.mrf.mxu0 }
 0x22a PF: > { %p927_p4 = scmp.eq.s32.totalorder %s1277_s30, 1  ;;  %s646_s12 = sshll.u32 %s1429_s7, 4  ;;  %s647_s12 = int_to_ptr.hbm [resolvable:$true] %s646_s12 }
 0x22b   : > { %s1207_s19 = smov [#allocation10]  }
 0x22c   : > { %s644_s0 = sshll.u32 %s1207_s19, 4  ;;  %s645_s0 = int_to_ptr.vmem [resolvable:$true] %s644_s0 }
 0x22d   : > { %903 = dma.vmem_to_hbm [thread:$0]  (%p927_p4), %s645_s0, 128, %s647_s12, [#allocation5]  }
 0x22e   : > { %1175 = dma.done.wait (%p927_p4), [#allocation5], 128  }
 0x22f   : > { %1177 = vsyncadd (%p927_p4), [#allocation5], 4294967168 }
 0x230 PF: > { %s20_s29 = sadd.s32 1, %s1200_s29   ;;  %s1442_s24 = smov %s1184_s25 }
 0x231   : > { %p17_p5 = scmp.ge.s32.totalorder %s20_s29, 4   ;;  %s1443_s25 = smov %s1188_s26 }
 0x232   : > { %s1444_s26 = smov %s1345_s1  ;;  %s1445_s27 = smov %s1196_s28 }
 0x233   : > { %s1446_s28 = smov %s1448_s13  ;;  %19 = sbr.rel (!%p17_p5) target bundleno = 9 (0x9), region = 109 }
 0x238   :  { %660 = vsyncpa [#allocation4], 1 }
 0x239   :  { %662 = vsyncpa [#allocation4 + $0x1], 1 }
 0x23a   :  { %663 = vsyncpa [#allocation7], 1 }
 0x23b   :  { %664 = vsyncpa [#allocation5], 1 }
 0x23c   :  { %666 = vsyncpa [#allocation5 + $0x1], 1 }

</bundles_post_ra>
